<compile_context>
chip_gen: v7x
topology: tpu7x:2x2x1
jax: 0.10.0
libtpu: 0.0.40
codegen_flags: <defaults>
</compile_context>

<pallas_src>
import functools

import jax
import jax.numpy as jnp
from jax.experimental import pallas as pl
from jax.experimental.pallas import tpu as pltpu


def _round_up(n: int, m: int) -> int:
    return (n + m - 1) // m * m


def _simple_model_kernel(x_ref, w_ref, b_ref, t_ref, pred_ref, sse_ref,
                         *, batch: int, tile_b: int):
    # x_ref    : (TILE_B, F) VMEM  input rows of this tile
    # w_ref    : (1, F)      VMEM  nn.Linear weight (PyTorch layout)
    # b_ref    : (1, 1)      SMEM  nn.Linear bias
    # t_ref    : (TILE_B, 1) VMEM  targets of this tile
    # pred_ref : (TILE_B, 1) VMEM  predictions out
    # sse_ref  : (1, 1)      SMEM  per-tile sum of squared errors out
    x = x_ref[...].astype(jnp.float32)     # in-kernel upcast (bf16-friendly)
    w = w_ref[...].astype(jnp.float32)     # (1, F) broadcasts over batch rows
    b = b_ref[0, 0]                        # scalar from SMEM

    # Matvec: VPU multiply + XLU lane reduction (MXU is dead weight at K=10).
    preds = jnp.sum(x * w, axis=-1, keepdims=True) + b        # (TILE_B, 1) f32
    pred_ref[...] = preds.astype(pred_ref.dtype)

    # Partial MSE numerator for this tile; rows beyond the real batch are
    # zero-padding and must not contribute.
    diff = preds - t_ref[...].astype(jnp.float32)
    row = pl.program_id(0) * tile_b + jax.lax.broadcasted_iota(
        jnp.int32, diff.shape, 0)
    sq = jnp.where(row < batch, diff * diff, 0.0)
    sse_ref[0, 0] = jnp.sum(sq)


def simple_model_forward(x, target, weight, bias, *, tile_b=4096):
    """Pallas equivalent of SimpleModel.forward.

    x:      (B, 10)  float32 (or bfloat16)
    target: (B, 1)   float32 (or bfloat16)
    weight: (1, 10)  float32   -- PyTorch nn.Linear layout, NOT transposed
    bias:   (1,)     float32

    Returns (preds (B, 1) f32, mse_loss f32 scalar).  The PyTorch module
    returns only preds; the MSE loss is computed + logged internally -- it is
    exposed here as a second output for verification.
    """
    B, F = x.shape

    # One (8-aligned) tile if the batch fits, otherwise `tile_b`-row tiles
    # (multiple of 128 keeps multi-tile blocks layout friendly).
    if B <= tile_b:
        tb = _round_up(B, 8)
    else:
        tb = tile_b
    b_pad = _round_up(B, tb)
    num_tiles = b_pad // tb

    if b_pad != B:  # zero-pad the ragged last tile (no-op when divisible)
        x = jnp.pad(x, ((0, b_pad - B), (0, 0)))
        target = jnp.pad(target, ((0, b_pad - B), (0, 0)))

    kernel = functools.partial(_simple_model_kernel, batch=B, tile_b=tb)

    preds, sse = pl.pallas_call(
        kernel,
        grid=(num_tiles,),
        in_specs=[
            pl.BlockSpec((tb, F), lambda i: (i, 0)),            # x tile
            pl.BlockSpec((1, F), lambda i: (0, 0)),             # weight
            pl.BlockSpec((1, 1), lambda i: (0, 0),
                         memory_space=pltpu.MemorySpace.SMEM),  # bias scalar
            pl.BlockSpec((tb, 1), lambda i: (i, 0)),            # target tile
        ],
        out_specs=(
            pl.BlockSpec((tb, 1), lambda i: (i, 0)),            # preds tile
            pl.BlockSpec((1, 1), lambda i: (i, 0),
                         memory_space=pltpu.MemorySpace.SMEM),  # per-tile SSE
        ),
        out_shape=(
            jax.ShapeDtypeStruct((b_pad, 1), jnp.float32),
            jax.ShapeDtypeStruct((num_tiles, 1), jnp.float32),
        ),
        compiler_params=pltpu.CompilerParams(
            dimension_semantics=("parallel",)),  # no cross-tile carry
    )(x, weight, bias.reshape(1, 1).astype(jnp.float32), target)

    loss = jnp.sum(sse) * jnp.float32(1.0 / B)  # 1/N folded once, wrapper-side
    return preds[:B], loss


if __name__ == "__main__":
    key = jax.random.PRNGKey(0)
    k_x, k_t, k_w, k_b, k_x2, k_t2 = jax.random.split(key, 6)

    B, F_IN, F_OUT = 8, 10, 1

    # Deterministic params mimicking nn.Linear default U[-1/sqrt(F), 1/sqrt(F)].
    bound = 1.0 / (F_IN ** 0.5)
    weight = jax.random.uniform(k_w, (F_OUT, F_IN), jnp.float32, -bound, bound)
    bias = jax.random.uniform(k_b, (F_OUT,), jnp.float32, -bound, bound)

    # data = {'inputs': x, 'targets': target}
    x = jax.random.normal(k_x, (B, F_IN), jnp.float32)
    target = jax.random.normal(k_t, (B, F_OUT), jnp.float32)

    preds, loss = simple_model_forward(x, target, weight, bias)
    preds = jax.block_until_ready(preds)
    loss = jax.block_until_ready(loss)

    ref_preds = x @ weight.T + bias
    ref_loss = jnp.mean((ref_preds - target) ** 2)
    assert preds.shape == (B, F_OUT)
    assert jnp.allclose(preds, ref_preds, atol=1e-5, rtol=1e-5)
    assert jnp.allclose(loss, ref_loss, atol=1e-5, rtol=1e-5)

    # Exercise the multi-tile pipelined path (grid=3, ragged masked last tile).
    B2 = 300
    x2 = jax.random.normal(k_x2, (B2, F_IN), jnp.float32)
    t2 = jax.random.normal(k_t2, (B2, F_OUT), jnp.float32)
    preds2, loss2 = simple_model_forward(x2, t2, weight, bias, tile_b=128)
    preds2 = jax.block_until_ready(preds2)
    loss2 = jax.block_until_ready(loss2)
    ref_preds2 = x2 @ weight.T + bias
    ref_loss2 = jnp.mean((ref_preds2 - t2) ** 2)
    assert preds2.shape == (B2, F_OUT)
    assert jnp.allclose(preds2, ref_preds2, atol=1e-5, rtol=1e-5)
    assert jnp.allclose(loss2, ref_loss2, atol=1e-5, rtol=1e-5)

    print("KERNEL_OK")
</pallas_src>

<mosaic_0001>
module attributes {stable_mosaic.version = 11 : i64} {
  func.func @_simple_model_kernel(%arg0: i32, %arg1: memref<8x10xf32, #tpu.memory_space<vmem>>, %arg2: memref<1x10xf32, #tpu.memory_space<vmem>>, %arg3: memref<1x1xf32, #tpu.memory_space<smem>>, %arg4: memref<8x1xf32, #tpu.memory_space<vmem>>, %arg5: memref<8x1xf32, #tpu.memory_space<vmem>>, %arg6: memref<1x1xf32, #tpu.memory_space<smem>>) attributes {dimension_semantics = [#tpu.dimension_semantics<parallel>], iteration_bounds = array<i64: 1>, scalar_prefetch = 0 : i64, scratch_operands = 0 : i64, tpu.core_type = #tpu.core_type<tc>, window_params = [{transform_indices = @transform_0, window_bounds = array<i64: 8, 10>}, {pipeline_mode = #tpu.pipeline_mode<synchronous>, transform_indices = @transform_1, window_bounds = array<i64: 1, 10>}, {transform_indices = @transform_2, window_bounds = array<i64: 1, 1>}, {transform_indices = @transform_3, window_bounds = array<i64: 8, 1>}, {transform_indices = @transform_4, window_bounds = array<i64: 8, 1>}, {transform_indices = @transform_5, window_bounds = array<i64: 1, 1>}]} {
    %c0 = arith.constant 0 : index
    %c0_0 = arith.constant 0 : index
    %0 = vector.load %arg1[%c0, %c0_0] : memref<8x10xf32, #tpu.memory_space<vmem>>, vector<8x10xf32>
    %c0_1 = arith.constant 0 : index
    %c0_2 = arith.constant 0 : index
    %1 = vector.load %arg2[%c0_1, %c0_2] : memref<1x10xf32, #tpu.memory_space<vmem>>, vector<1x10xf32>
    %c0_3 = arith.constant 0 : index
    %c0_4 = arith.constant 0 : index
    %2 = memref.load %arg3[%c0_3, %c0_4] : memref<1x1xf32, #tpu.memory_space<smem>>
    %3 = vector.broadcast %1 : vector<1x10xf32> to vector<8x10xf32>
    %4 = arith.mulf %0, %3 : vector<8x10xf32>
    %cst = arith.constant dense<0.000000e+00> : vector<8xf32>
    %5 = vector.multi_reduction <add>, %4, %cst [1] : vector<8x10xf32> to vector<8xf32>
    %6 = vector.shape_cast %5 : vector<8xf32> to vector<8x1xf32>
    %7 = vector.broadcast %2 : f32 to vector<8x1xf32>
    %8 = arith.addf %6, %7 : vector<8x1xf32>
    %c0_5 = arith.constant 0 : index
    %c0_6 = arith.constant 0 : index
    %9 = vector.load %arg5[%c0_5, %c0_6] : memref<8x1xf32, #tpu.memory_space<vmem>>, vector<8x1xf32>
    tpu.vector_store %arg5[%c0_5, %c0_6], %8 {strides = array<i32>} : memref<8x1xf32, #tpu.memory_space<vmem>>, vector<8x1xf32>,
    %c0_7 = arith.constant 0 : index
    %c0_8 = arith.constant 0 : index
    %10 = vector.load %arg4[%c0_7, %c0_8] : memref<8x1xf32, #tpu.memory_space<vmem>>, vector<8x1xf32>
    %11 = arith.subf %8, %10 : vector<8x1xf32>
    %c8_i32 = arith.constant 8 : i32
    %12 = arith.muli %arg0, %c8_i32 : i32
    %13 = tpu.iota {dimensions = array<i32: 0>} : vector<8x1xi32>
    %14 = vector.broadcast %12 : i32 to vector<8x1xi32>
    %15 = arith.addi %14, %13 : vector<8x1xi32>
    %c8_i32_9 = arith.constant 8 : i32
    %16 = vector.broadcast %c8_i32_9 : i32 to vector<8x1xi32>
    %17 = arith.cmpi slt, %15, %16 : vector<8x1xi32>
    %18 = arith.mulf %11, %11 : vector<8x1xf32>
    %cst_10 = arith.constant 0.000000e+00 : f32
    %19 = vector.broadcast %cst_10 : f32 to vector<8x1xf32>
    %20 = arith.select %17, %18, %19 : vector<8x1xi1>, vector<8x1xf32>
    %21 = vector.shape_cast %20 : vector<8x1xf32> to vector<1x8x1xf32>
    %cst_11 = arith.constant dense<0.000000e+00> : vector<1xf32>
    %22 = vector.multi_reduction <add>, %21, %cst_11 [1, 2] : vector<1x8x1xf32> to vector<1xf32>
    %23 = vector.shape_cast %22 : vector<1xf32> to vector<1x1x1xf32>
    %24 = vector.extract %23[0, 0, 0] : f32 from vector<1x1x1xf32>
    %c0_12 = arith.constant 0 : index
    %c0_13 = arith.constant 0 : index
    %25 = memref.load %arg6[%c0_12, %c0_13] : memref<1x1xf32, #tpu.memory_space<smem>>
    memref.store %24, %arg6[%c0_12, %c0_13] : memref<1x1xf32, #tpu.memory_space<smem>>
    return
  }
  func.func @transform_0(%arg0: i32) -> (i32, i32) {
    %c0_i32 = arith.constant 0 : i32
    %c0_i32_0 = arith.constant 0 : i32
    return %arg0, %c0_i32 : i32, i32
  }
  func.func @transform_1(%arg0: i32) -> (i32, i32) {
    %c0_i32 = arith.constant 0 : i32
    %c0_i32_0 = arith.constant 0 : i32
    %c0_i32_1 = arith.constant 0 : i32
    return %c0_i32, %c0_i32_0 : i32, i32
  }
  func.func @transform_2(%arg0: i32) -> (i32, i32) {
    %c0_i32 = arith.constant 0 : i32
    %c0_i32_0 = arith.constant 0 : i32
    %c0_i32_1 = arith.constant 0 : i32
    return %c0_i32, %c0_i32_0 : i32, i32
  }
  func.func @transform_3(%arg0: i32) -> (i32, i32) {
    %c0_i32 = arith.constant 0 : i32
    %c0_i32_0 = arith.constant 0 : i32
    return %arg0, %c0_i32 : i32, i32
  }
  func.func @transform_4(%arg0: i32) -> (i32, i32) {
    %c0_i32 = arith.constant 0 : i32
    %c0_i32_0 = arith.constant 0 : i32
    return %arg0, %c0_i32 : i32, i32
  }
  func.func @transform_5(%arg0: i32) -> (i32, i32) {
    %c0_i32 = arith.constant 0 : i32
    %c0_i32_0 = arith.constant 0 : i32
    return %arg0, %c0_i32 : i32, i32
  }
}

</mosaic_0001>

<bundles_post_ra>
// kernel: tpu_custom_call.1
= control target key start
LH: loop header
LB: loop body
LE: loop exit
PB: predicated region body
PF: predicated region fallthrough
CT: control target
= control target key end

     0   :  { %vm31_vm0 = vcmask 80896   ;;  %s152_s0 = inlined_call_operand.vmem [shape: f32[8,10], index: 0, kind: input, shape index: {}]   ;;  %s153_s1 = inlined_call_operand.vmem [shape: f32[1,10], index: 1, kind: input, shape index: {}]   ;;  %s154_s2 = inlined_call_operand.<no memory space> [shape: f32[1,1], index: 2, kind: input, shape index: {}]   ;;  %s155_s3 = inlined_call_operand.vmem [shape: f32[8,1], index: 3, kind: input, shape index: {}]   ;;  %s156_s4 = inlined_call_operand.vmem [shape: f32[8,1], index: 4, kind: output, shape index: {0}]   ;;  %s157_s5 = inlined_call_operand.hbm [shape: f32[1,1], index: 5, kind: output, shape index: {1}]  }
   0x1   :  { %v21_v0 = vld [vmem:[%s152_s0] sm:$0xff] }
   0x2   :  { %v78_v1 = vld [vmem:[%s153_s1] ss:$0 sm:$0xff] }
   0x3   :  { %v30_v2 = vmul.f32 %v78_v1, %v21_v0 }
   0x4   :  { %12 = vsyncpa [#allocation4], 0  ;;  %v35_v4 = vstv %s154_s2  ;;  %v39_v5 = vld [vmem:[%s155_s3] sm:$0xff]  ;;  %vm37_vm1 = vcmask 7168   ;;  %s82_s27 = scalar_lea.hbm %s157_s5, 16 }
   0x5   :  { %v32_v3 = vsel %vm31_vm0, %v30_v2, 0.0  ;;  %p83_p0 = scmp.ne.s32.totalorder %s157_s5, %s82_s27  ;;  %p86_p1 = scmp.lt.u32.totalorder %s82_s27, %s157_s5 }
   0x6   :  { %33 = vadd.xlane.f32.xlu0 %v32_v3 }
   0x7   :  { %p88_p2 = pnand %p86_p1, %p83_p0 }
  0x93   :  { %v34_v6 = vpop.xlane.xlu0 %33 }
  0x94   :  { %v36_v7 = vadd.f32 %v35_v4, %v34_v6 }
  0x96   :  { %v40_v8 = vsub.f32 %v36_v7, %v39_v5  ;;  %38 = vst.msk [vmem:[%s156_s4] sm:$0xff] %vm37_vm1, %v36_v7 }
  0x98   :  { %v47_v9 = vmul.f32 %v40_v8, %v40_v8 }
  0x9a   :  { %v49_v10 = vsel %vm37_vm1, %v47_v9, 0.0 }
  0x9b   :  { %50 = vadd.xlane.f32.xlu0 %v49_v10 }
 0x128   :  { %v51_v11 = vpop.xlane.xlu0 %50 }
 0x129   :  { %v52_v12 = vrot.slane %v51_v11, 4 }
 0x12b   :  { %v53_v13 = vadd.f32 %v52_v12, %v51_v11 }
 0x12d   :  { %v54_v14 = vrot.slane %v53_v13, 2 }
 0x12f   :  { %v55_v15 = vadd.f32 %v54_v14, %v53_v13 }
 0x131   :  { %v56_v16 = vrot.slane %v55_v15, 1 }
 0x133   :  { %v57_v17 = vadd.f32 %v56_v16, %v55_v15 }
 0x135   :  { %79 = vpush %v57_v17 }
 0x166   :  { %s80_s1 = spop %79 }
 0x167   :  { %60 = sst [smem:[#allocation3]] %s80_s1 }
 0x168   :  { %91 = shalt.err (!%p88_p2)
}
 0x169   :  { %s94_s6 = smov [#allocation3]  }
 0x16a   :  { %70 = dma.smem_to_hbm %s94_s6, 16, %s157_s5, [#allocation4]  }
 0x16b   :  { %92 = dma.done.wait [#allocation4], 16  }
 0x16c   :  { %93 = vsyncadd [#allocation4], 4294967280 }
 0x16d   :  { %76 = sfence }
 0x16e   :  { %77 = vsyncpa [#allocation4], 1 }

</bundles_post_ra>
